<compile_context>
chip_gen: v5e
topology: v5e:2x2
jax: 0.10.0
libtpu: 0.0.40
codegen_flags: <defaults>
</compile_context>

<pallas_src>
import jax
import jax.numpy as jnp
from jax import lax
from jax.experimental import pallas as pl
from jax.experimental.pallas import tpu as pltpu


def _make_bn_kernel(eps: float, inv_count: float):
    def bn_kernel(x_ref, w_ref, b_ref, o_ref):
        # x_ref: (N, Ct, HW)   -- channel on sublane axis, spatial on lane axis
        # w_ref, b_ref: (1, Ct, 1)
        x = x_ref[...].astype(jnp.float32)

        # Per-channel sum and sum of squares: lane reduce first, then batch.
        s = jnp.sum(x, axis=2, keepdims=True)           # (N, Ct, 1)
        s = jnp.sum(s, axis=0, keepdims=True)           # (1, Ct, 1)
        ss = jnp.sum(x * x, axis=2, keepdims=True)      # (N, Ct, 1)
        ss = jnp.sum(ss, axis=0, keepdims=True)         # (1, Ct, 1)

        mean = s * inv_count
        # Biased variance (matches torch var(unbiased=False)); clamp guards the
        # E[x^2] - mean^2 cancellation in float32.
        var = jnp.maximum(ss * inv_count - mean * mean, 0.0)
        inv_std = lax.rsqrt(var + eps)

        # Fold affine params into one per-channel FMA: y = x * scale + shift.
        scale = w_ref[...] * inv_std                    # (1, Ct, 1)
        shift = b_ref[...] - mean * scale               # (1, Ct, 1)
        o_ref[...] = (x * scale + shift).astype(o_ref.dtype)

    return bn_kernel


def _pick_channel_tile(N, C, HW, itemsize, target_block_bytes=1 << 20):
    """Largest channel tile (multiple of 8 dividing C, or full C) whose x-block
    fits the per-block target; keeps >=4 grid steps for pipelining at spec-size
    shapes while staying well inside VMEM on all generations."""
    if C % 8 != 0:
        return C  # small / odd C: full-extent block satisfies the (8,128) rule
    bytes_per_channel = N * HW * itemsize
    cands = [t for t in range(C, 7, -8) if C % t == 0]  # descending
    for t in cands:
        if t * bytes_per_channel <= target_block_bytes:
            return t
    return cands[-1]  # smallest (8 channels)


def my_batch_norm(x_nchw, weight, bias, eps: float = 1e-5):
    """Forward of MyBatchNorm (training / batch-stats path) on TPU via Pallas.

    x_nchw: (N, C, H, W); weight, bias: (C,)
    """
    N, C, H, W = x_nchw.shape
    HW = H * W
    inv_count = 1.0 / float(N * HW)

    # Free reshapes only -- no HBM transposes.
    x3 = x_nchw.reshape(N, C, HW)
    w3 = weight.astype(jnp.float32).reshape(1, C, 1)
    b3 = bias.astype(jnp.float32).reshape(1, C, 1)

    itemsize = max(jnp.dtype(x3.dtype).itemsize, 4)  # compute happens in f32
    c_tile = _pick_channel_tile(N, C, HW, itemsize)
    grid = (C // c_tile,)

    block_bytes = N * c_tile * HW * itemsize
    # double-buffered input + output + f32 temporaries / params headroom
    vmem_needed = 6 * block_bytes + (1 << 20)
    vmem_limit = int(min(max(vmem_needed, 32 << 20), 60 << 20))

    # TODO(synk): running_mean / running_var / num_batches_tracked buffer updates
    # are training-time side effects that do not affect the returned tensor and
    # are not materialized here.
    # TODO(synk): for extreme N*H*W where even an 8-channel block exceeds VMEM,
    # a two-pass M-tiled sum/sumsq-accumulator variant would be required.

    kernel = _make_bn_kernel(float(eps), inv_count)
    out3 = pl.pallas_call(
        kernel,
        out_shape=jax.ShapeDtypeStruct((N, C, HW), x3.dtype),
        grid_spec=pltpu.PrefetchScalarGridSpec(
            num_scalar_prefetch=0,
            grid=grid,
            in_specs=[
                pl.BlockSpec((N, c_tile, HW), lambda c: (0, c, 0)),
                pl.BlockSpec((1, c_tile, 1), lambda c: (0, c, 0)),
                pl.BlockSpec((1, c_tile, 1), lambda c: (0, c, 0)),
            ],
            out_specs=pl.BlockSpec((N, c_tile, HW), lambda c: (0, c, 0)),
        ),
        compiler_params=pltpu.CompilerParams(
            dimension_semantics=("parallel",),
            vmem_limit_bytes=vmem_limit,
        ),
    )(x3, w3, b3)

    return out3.reshape(N, C, H, W)


if __name__ == "__main__":
    key = jax.random.PRNGKey(0)
    N, C, H, W = 2, 4, 16, 16
    x = jax.random.normal(key, (N, C, H, W), dtype=jnp.float32)

    # Deterministic parameter init matching nn.Module __init__:
    # weight = ones(num_features), bias = zeros(num_features)
    weight = jnp.ones((C,), dtype=jnp.float32)
    bias = jnp.zeros((C,), dtype=jnp.float32)

    y = my_batch_norm(x, weight, bias, eps=1e-5)
    y = jax.block_until_ready(y)

    # Reference in plain JAX (same semantics as the PyTorch training forward).
    mean = jnp.mean(x, axis=(0, 2, 3), keepdims=True)
    var = jnp.mean((x - mean) ** 2, axis=(0, 2, 3), keepdims=True)
    x_hat = (x - mean) / jnp.sqrt(var + 1e-5)
    ref = weight.reshape(1, C, 1, 1) * x_hat + bias.reshape(1, C, 1, 1)

    assert y.shape == (N, C, H, W)
    assert jnp.allclose(y, ref, atol=1e-4, rtol=1e-4), float(jnp.max(jnp.abs(y - ref)))
    print("KERNEL_OK")
</pallas_src>

<mosaic_0001>
module attributes {stable_mosaic.version = 11 : i64} {
  func.func @bn_kernel(%arg0: i32, %arg1: memref<2x4x256xf32, #tpu.memory_space<vmem>>, %arg2: memref<1x4x1xf32, #tpu.memory_space<vmem>>, %arg3: memref<1x4x1xf32, #tpu.memory_space<vmem>>, %arg4: memref<2x4x256xf32, #tpu.memory_space<vmem>>) attributes {dimension_semantics = [#tpu.dimension_semantics<parallel>], iteration_bounds = array<i64: 1>, scalar_prefetch = 0 : i64, scratch_operands = 0 : i64, tpu.core_type = #tpu.core_type<tc>, window_params = [{transform_indices = @transform_0, window_bounds = array<i64: 2, 4, 256>}, {transform_indices = @transform_1, window_bounds = array<i64: 1, 4, 1>}, {transform_indices = @transform_2, window_bounds = array<i64: 1, 4, 1>}, {transform_indices = @transform_3, window_bounds = array<i64: 2, 4, 256>}]} {
    %c0 = arith.constant 0 : index
    %c0_0 = arith.constant 0 : index
    %c0_1 = arith.constant 0 : index
    %0 = vector.load %arg1[%c0, %c0_0, %c0_1] : memref<2x4x256xf32, #tpu.memory_space<vmem>>, vector<2x4x256xf32>
    %cst = arith.constant dense<0.000000e+00> : vector<2x4xf32>
    %1 = vector.multi_reduction <add>, %0, %cst [2] : vector<2x4x256xf32> to vector<2x4xf32>
    %2 = vector.shape_cast %1 : vector<2x4xf32> to vector<2x4x1xf32>
    %cst_2 = arith.constant dense<0.000000e+00> : vector<4x1xf32>
    %3 = vector.multi_reduction <add>, %2, %cst_2 [0] : vector<2x4x1xf32> to vector<4x1xf32>
    %4 = vector.shape_cast %3 : vector<4x1xf32> to vector<1x4x1xf32>
    %5 = arith.mulf %0, %0 : vector<2x4x256xf32>
    %cst_3 = arith.constant dense<0.000000e+00> : vector<2x4xf32>
    %6 = vector.multi_reduction <add>, %5, %cst_3 [2] : vector<2x4x256xf32> to vector<2x4xf32>
    %7 = vector.shape_cast %6 : vector<2x4xf32> to vector<2x4x1xf32>
    %cst_4 = arith.constant dense<0.000000e+00> : vector<4x1xf32>
    %8 = vector.multi_reduction <add>, %7, %cst_4 [0] : vector<2x4x1xf32> to vector<4x1xf32>
    %9 = vector.shape_cast %8 : vector<4x1xf32> to vector<1x4x1xf32>
    %cst_5 = arith.constant 0.001953125 : f32
    %10 = vector.broadcast %cst_5 : f32 to vector<1x4x1xf32>
    %11 = arith.mulf %4, %10 : vector<1x4x1xf32>
    %cst_6 = arith.constant 0.001953125 : f32
    %12 = vector.broadcast %cst_6 : f32 to vector<1x4x1xf32>
    %13 = arith.mulf %9, %12 : vector<1x4x1xf32>
    %14 = arith.mulf %11, %11 : vector<1x4x1xf32>
    %15 = arith.subf %13, %14 : vector<1x4x1xf32>
    %cst_7 = arith.constant 0.000000e+00 : f32
    %16 = vector.broadcast %cst_7 : f32 to vector<1x4x1xf32>
    %17 = arith.maximumf %15, %16 : vector<1x4x1xf32>
    %cst_8 = arith.constant 9.99999974E-6 : f32
    %18 = vector.broadcast %cst_8 : f32 to vector<1x4x1xf32>
    %19 = arith.addf %17, %18 : vector<1x4x1xf32>
    %20 = math.rsqrt %19 : vector<1x4x1xf32>
    %c0_9 = arith.constant 0 : index
    %c0_10 = arith.constant 0 : index
    %c0_11 = arith.constant 0 : index
    %21 = vector.load %arg2[%c0_9, %c0_10, %c0_11] : memref<1x4x1xf32, #tpu.memory_space<vmem>>, vector<1x4x1xf32>
    %22 = arith.mulf %21, %20 : vector<1x4x1xf32>
    %c0_12 = arith.constant 0 : index
    %c0_13 = arith.constant 0 : index
    %c0_14 = arith.constant 0 : index
    %23 = vector.load %arg3[%c0_12, %c0_13, %c0_14] : memref<1x4x1xf32, #tpu.memory_space<vmem>>, vector<1x4x1xf32>
    %24 = arith.mulf %11, %22 : vector<1x4x1xf32>
    %25 = arith.subf %23, %24 : vector<1x4x1xf32>
    %26 = vector.broadcast %22 : vector<1x4x1xf32> to vector<2x4x256xf32>
    %27 = arith.mulf %0, %26 : vector<2x4x256xf32>
    %28 = vector.broadcast %25 : vector<1x4x1xf32> to vector<2x4x256xf32>
    %29 = arith.addf %27, %28 : vector<2x4x256xf32>
    %c0_15 = arith.constant 0 : index
    %c0_16 = arith.constant 0 : index
    %c0_17 = arith.constant 0 : index
    %30 = vector.load %arg4[%c0_15, %c0_16, %c0_17] : memref<2x4x256xf32, #tpu.memory_space<vmem>>, vector<2x4x256xf32>
    tpu.vector_store %arg4[%c0_15, %c0_16, %c0_17], %29 {strides = array<i32>} : memref<2x4x256xf32, #tpu.memory_space<vmem>>, vector<2x4x256xf32>,
    return
  }
  func.func @transform_0(%arg0: i32) -> (i32, i32, i32) {
    %c0_i32 = arith.constant 0 : i32
    %c0_i32_0 = arith.constant 0 : i32
    %c0_i32_1 = arith.constant 0 : i32
    return %c0_i32, %arg0, %c0_i32_0 : i32, i32, i32
  }
  func.func @transform_1(%arg0: i32) -> (i32, i32, i32) {
    %c0_i32 = arith.constant 0 : i32
    %c0_i32_0 = arith.constant 0 : i32
    %c0_i32_1 = arith.constant 0 : i32
    return %c0_i32, %arg0, %c0_i32_0 : i32, i32, i32
  }
  func.func @transform_2(%arg0: i32) -> (i32, i32, i32) {
    %c0_i32 = arith.constant 0 : i32
    %c0_i32_0 = arith.constant 0 : i32
    %c0_i32_1 = arith.constant 0 : i32
    return %c0_i32, %arg0, %c0_i32_0 : i32, i32, i32
  }
  func.func @transform_3(%arg0: i32) -> (i32, i32, i32) {
    %c0_i32 = arith.constant 0 : i32
    %c0_i32_0 = arith.constant 0 : i32
    %c0_i32_1 = arith.constant 0 : i32
    return %c0_i32, %arg0, %c0_i32_0 : i32, i32, i32
  }
}

</mosaic_0001>

<bundles_post_ra>
// kernel: tpu_custom_call.1
= control target key start
LH: loop header
LB: loop body
LE: loop exit
PB: predicated region body
PF: predicated region fallthrough
CT: control target
= control target key end

     0   :  { %8 = vsyncpa [#allocation3], 0  ;;  %s282_s0 = inlined_call_operand.hbm [shape: f32[2,4,256], index: 0, kind: input, shape index: {}]   ;;  %s283_s1 = inlined_call_operand.vmem [shape: f32[1,4,1], index: 1, kind: input, shape index: {}]   ;;  %s284_s2 = inlined_call_operand.vmem [shape: f32[1,4,1], index: 2, kind: input, shape index: {}]   ;;  %s285_s3 = inlined_call_operand.hbm [shape: f32[2,4,256], index: 3, kind: output, shape index: {}]  }
   0x1   :  { %9 = vsyncpa [#allocation4], 0  ;;  %s14_s14 = sshll.u32 %s282_s0, 4  ;;  %s214_s15 = smov [#allocation2]   ;;  %s15_s14 = int_to_ptr.hbm [resolvable:$true] %s14_s14 }
   0x2   :  { %s16_s16 = sshll.u32 %s214_s15, 4  ;;  %s215_s17 = smov 128   ;;  %s17_s16 = int_to_ptr.vmem [resolvable:$true] %s16_s16 }
   0x3   :  { %s216_s18 = smov 8  }
   0x4   :  { %22 = dma.hbm_to_vmem [thread:$0]  %s15_s14, 256, %s17_s16, [#allocation3], %s215_s17, %s215_s17, %s216_s18  }
   0x5   :  { %210 = dma.done.wait [#allocation3], 256  }
   0x6   :  { %211 = vsyncadd [#allocation3], 4294967040  ;;  %v246_v0 = vld [vmem:[#allocation2] sm:$0xff]  ;;  %v248_v1 = vld [vmem:[#allocation2 + $0x8] sm:$0xff]  ;;  %vm46_vm0 = vcmask 1043456   ;;  %v217_v25 = vmov 0  }
   0x7   :  { %35 = vst [vmem:[#allocation1] ss:$2 sm:$0xff] %v246_v0  ;;  %v60_v2 = vmul.f32 %v246_v0, %v246_v0  ;;  %v61_v3 = vmul.f32 %v248_v1, %v248_v1  ;;  %158 = vset.pattern.permute.xlu2 %v217_v25  ;;  %159 = vset.pattern.permute.xlu0 %v217_v25  ;;  %v104_v47 = vld [vmem:[%s283_s1] sm:$0xf]  ;;  %v218_v53 = vmov 839922192  }
   0x8   :  { %39 = vst [vmem:[#allocation1 + $0x10] ss:$2 sm:$0xff] %v248_v1  ;;  %v106_v51 = vld [vmem:[%s284_s2] sm:$0xf]  ;;  %v114_v54 = vunpack.c.l.s4 %v218_v53  ;;  %s219_s1 = smov [#allocation5]   ;;  %s139_s25 = sshll.u32 %s285_s3, 4  ;;  %s140_s25 = int_to_ptr.hbm [resolvable:$true] %s139_s25 }
   0x9   :  { %s137_s22 = sshll.u32 %s219_s1, 4  ;;  %s138_s22 = int_to_ptr.vmem [resolvable:$true] %s137_s22 }
   0xa   :  { %v115_v56 = vunpack.c.0.s8 %v114_v54 }
   0xe   :  { %v36_v4 = vld.sshfl [vmem:[#allocation1] sm:$0xff pattern:$0x75316420]  ;;  %v37_v5 = vld.sshfl [vmem:[#allocation1 + $0x8] sm:$0xff pattern:$0x75316420] }
   0xf   :  { %v47_v6 = vsel %vm46_vm0, %v36_v4, 0.0  ;;  %v48_v7 = vsel %vm46_vm0, %v37_v5, 0.0  ;;  %64 = vst [vmem:[#allocation1] ss:$2 sm:$0xff] %v60_v2 }
  0x10   :  { %v49_v8 = vadd.f32 %v48_v7, %v47_v6  ;;  %v40_v9 = vld.sshfl [vmem:[#allocation1 + $0x10] sm:$0xff pattern:$0x75316420]  ;;  %v41_v10 = vld.sshfl [vmem:[#allocation1 + $0x18] sm:$0xff pattern:$0x75316420] }
  0x11   :  { %68 = vst [vmem:[#allocation1 + $0x10] ss:$2 sm:$0xff] %v61_v3  ;;  %v52_v11 = vsel %vm46_vm0, %v40_v9, 0.0  ;;  %v53_v12 = vsel %vm46_vm0, %v41_v10, 0.0 }
  0x12   :  { %50 = vadd.xlane.f32.xlu0 %v49_v8  ;;  %v54_v15 = vadd.f32 %v53_v12, %v52_v11 }
  0x16   :  { %v65_v13 = vld.sshfl [vmem:[#allocation1] sm:$0xff pattern:$0x75316420]  ;;  %v66_v14 = vld.sshfl [vmem:[#allocation1 + $0x8] sm:$0xff pattern:$0x75316420] }
  0x17   :  { %v75_v16 = vsel %vm46_vm0, %v65_v13, 0.0  ;;  %v76_v17 = vsel %vm46_vm0, %v66_v14, 0.0 }
  0x18   :  { %v77_v18 = vadd.f32 %v76_v17, %v75_v16  ;;  %v69_v19 = vld.sshfl [vmem:[#allocation1 + $0x10] sm:$0xff pattern:$0x75316420]  ;;  %v70_v20 = vld.sshfl [vmem:[#allocation1 + $0x18] sm:$0xff pattern:$0x75316420] }
  0x19   :  { %v80_v21 = vsel %vm46_vm0, %v69_v19, 0.0  ;;  %v81_v22 = vsel %vm46_vm0, %v70_v20, 0.0 }
  0x1a   :  { %78 = vadd.xlane.f32.xlu1 %v77_v18  ;;  %55 = vadd.xlane.f32.xlu0 %v54_v15  ;;  %v82_v23 = vadd.f32 %v81_v22, %v80_v21 }
  0x22   :  { %83 = vadd.xlane.f32.xlu1 %v82_v23 }
  0x85   :  { %v51_v24 = vpop.xlane.xlu0 %50 }
  0x86   :  { %v57_v29 = vsel %vm46_vm0, %v51_v24, 0.0 }
  0x8d   :  { %v79_v26 = vpop.xlane.xlu1 %78  ;;  %v56_v27 = vpop.xlane.xlu0 %55 }
  0x8e   :  { %v58_v28 = vsel %vm46_vm0, %v56_v27, 0.0  ;;  %v85_v33 = vsel %vm46_vm0, %v79_v26, 0.0 }
  0x8f   :  { %v59_v30 = vadd.f32 %v58_v28, %v57_v29 }
  0x91   :  { %v88_v31 = vmul.f32 0.001953125, %v59_v30 }
  0x93   :  { %v90_v36 = vmul.f32 %v88_v31, %v88_v31 }
  0x95   :  { %v84_v32 = vpop.xlane.xlu1 %83 }
  0x96   :  { %v86_v34 = vsel %vm46_vm0, %v84_v32, 0.0 }
  0x97   :  { %v87_v35 = vadd.f32 %v86_v34, %v85_v33 }
  0x99   :  { %v89_v37 = vmul.f32 0.001953125, %v87_v35 }
  0x9b   :  { %v91_v38 = vsub.f32 %v89_v37, %v90_v36 }
  0x9d   :  { %v92_v39 = vmax.f32 %v91_v38, 0.0 }
  0x9f   :  { %v93_v40 = vadd.f32 1e-05, %v92_v39 }
  0xa1   :  { %160 = vrsqrt.f32 %v93_v40  ;;  %vm100_vm2 = vweird.f32 %v93_v40 }
  0xa7   :  { %v161_v41 = vpop.eup %160 }
  0xa8   :  { %v95_v42 = vmul.f32 %v161_v41, %v93_v40  ;;  %vm101_vm1 = vweird.f32 %v161_v41 }
  0xa9   :  { %vm102_vm3 = vmor %vm100_vm2, %vm101_vm1 }
  0xaa   :  { %v96_v43 = vmul.f32 %v161_v41, %v95_v42 }
  0xac   :  { %v97_v44 = vmul.f32 0.5, %v96_v43 }
  0xae   :  { %v98_v45 = vsub.f32 1.5, %v97_v44 }
  0xb0   :  { %v99_v46 = vmul.f32 %v161_v41, %v98_v45 }
  0xb2   :  { %v103_v48 = vsel %vm102_vm3, %v161_v41, %v99_v46 }
  0xb3   :  { %v105_v49 = vmul.f32 %v104_v47, %v103_v48 }
  0xb5   :  { %111 = vperm.xlu2 %158, %v105_v49   ;;  %v107_v50 = vmul.f32 %v105_v49, %v88_v31 }
  0xb7   :  { %v108_v52 = vsub.f32 %v106_v51, %v107_v50 }
  0xbd   :  { %122 = vperm.xlu2 %158, %v108_v52  }
 0x10f   :  { %v112_v55 = vpop.permute.xlu2 %111 }
 0x110   :  { %v116_v57 = vperm.slane %v112_v55, %v115_v56 }
 0x112   :  { %v118_v59 = vmul.f32 %v116_v57, %v246_v0  ;;  %v119_v60 = vmul.f32 %v116_v57, %v248_v1 }
 0x117   :  { %v123_v58 = vpop.permute.xlu2 %122 }
 0x118   :  { %v127_v61 = vperm.slane %v123_v58, %v115_v56 }
 0x11a   :  { %v129_v62 = vadd.f32 %v127_v61, %v118_v59  ;;  %v130_v63 = vadd.f32 %v127_v61, %v119_v60 }
 0x11c   :  { %131 = vst [vmem:[#allocation5] sm:$0xff] %v129_v62 }
 0x11d   :  { %132 = vst [vmem:[#allocation5 + $0x8] sm:$0xff] %v130_v63 }
 0x11e   :  { %145 = dma.vmem_to_hbm [thread:$0]  %s138_s22, 256, %s140_s25, [#allocation4], %s215_s17, %s215_s17, %s216_s18  }
 0x11f   :  { %212 = dma.done.wait [#allocation4], 256  }
 0x120   :  { %213 = vsyncadd [#allocation4], 4294967040 }
 0x121   :  { %150 = vsyncpa [#allocation3], 1 }
 0x122   :  { %151 = vsyncpa [#allocation4], 1 }

</bundles_post_ra>
